<compile_context>
chip_gen: v7x
topology: tpu7x:2x2x1
jax: 0.10.0
libtpu: 0.0.40
codegen_flags: <defaults>
</compile_context>

<pallas_src>
import math

import jax
import jax.numpy as jnp
from jax.experimental import pallas as pl
from jax.experimental.pallas import tpu as pltpu


def _round_up(x: int, m: int) -> int:
    return ((x + m - 1) // m) * m


def _sum_weights_kernel(na_ref, ef_ref, w_ref, o_ref):
    # One VPU multiply of two lane-dense [TB, AE] tiles ...
    p = na_ref[...] * ef_ref[...]
    # ... and one MXU matmul over the fused A*E axis, f32 accumulation.
    o_ref[...] = jnp.dot(
        p, w_ref[...], preferred_element_type=jnp.float32
    ).astype(o_ref.dtype)


def sum_two_tensor_multiplied_by_weights(node_attrs, edge_feats, weights):
    """node_attrs [B, A], edge_feats [B, E], weights [A, E, K] -> [B, K]."""
    B, A = node_attrs.shape
    B2, E = edge_feats.shape
    A2, E2, K = weights.shape
    assert B == B2 and A == A2 and E == E2

    out_dtype = jnp.result_type(node_attrs.dtype, edge_feats.dtype, weights.dtype)
    itemsize = jnp.dtype(out_dtype).itemsize
    AE = A * E

    # --- wrapper-side layout plumbing (keeps the kernel one vmul + one vmatmul) ---
    # p[b, a*E + e] = node_attrs[b, a] * edge_feats[b, e]
    # -> na_rep[b, a*E + e] = node_attrs[b, a]   (repeat each column E times)
    #    ef_rep[b, a*E + e] = edge_feats[b, e]   (tile the E columns A times)
    na_rep = jnp.repeat(node_attrs.astype(out_dtype), E, axis=1)      # [B, AE]
    ef_rep = jnp.tile(edge_feats.astype(out_dtype), (1, A))           # [B, AE]
    w2d = weights.astype(out_dtype).reshape(AE, K)                    # [AE, K]
    # TODO(synk): when used as a module parameter, store the weights pre-flattened
    # as [A*E, K] so this reshape is not re-emitted per call.

    # --- tiling ---
    # Batch tile: multiple of 8 sublanes, >= 2 grid steps when B permits (so the
    # "parallel" axis shards across both v7x TensorCores), capped at 1024 rows
    # and by an input-tile VMEM budget.
    input_budget = 16 * 1024 * 1024          # na_rep + ef_rep tiles, double-buffered
    tb_cap = max(8, (input_budget // (4 * AE * itemsize)) // 8 * 8)
    TB = min(1024, tb_cap, _round_up(max(pl.cdiv(B, 2), 1), 8))
    nb = pl.cdiv(B, TB)

    # K tile: weights fully resident when the slab is comfortably small,
    # otherwise tile K in lane-dense chunks (bounds double-buffered slab on v7x).
    weight_budget = 8 * 1024 * 1024
    if AE * K * itemsize <= weight_budget:
        TK = K
    else:
        TK = max(128, (weight_budget // (AE * itemsize)) // 128 * 128)
    nk = pl.cdiv(K, TK)

    # K-tile axis outer, batch axis inner: the weight block index is constant
    # across the inner batch sweep, so it is fetched once per K tile.
    grid = (nk, nb)

    # VMEM: actual double-buffered tile footprint + headroom, capped below the
    # physical per-core VMEM of the current generation (64 MiB on v7x).
    tile_bytes = (
        2 * 2 * TB * AE * itemsize       # na_rep + ef_rep tiles (double-buffered)
        + 2 * AE * TK * itemsize         # weight block (double-buffered)
        + 2 * TB * TK * itemsize         # output tile (double-buffered)
    )
    try:
        vmem_cap = int(pltpu.get_tpu_info().vmem_capacity_bytes)
    except Exception:
        vmem_cap = 64 * 1024 * 1024
    vmem_limit = int(min(max(tile_bytes + (4 << 20), 8 << 20), int(vmem_cap * 0.75)))

    cost = pl.CostEstimate(
        flops=2 * B * AE * K + B * AE,
        transcendentals=0,
        bytes_accessed=(2 * B * AE + AE * K + B * K) * itemsize,
    )

    out = pl.pallas_call(
        _sum_weights_kernel,
        out_shape=jax.ShapeDtypeStruct((B, K), out_dtype),
        grid_spec=pltpu.PrefetchScalarGridSpec(
            num_scalar_prefetch=0,
            grid=grid,
            in_specs=[
                pl.BlockSpec((TB, AE), lambda j, i: (i, 0)),   # node_attrs (expanded)
                pl.BlockSpec((TB, AE), lambda j, i: (i, 0)),   # edge_feats (expanded)
                pl.BlockSpec((AE, TK), lambda j, i: (0, j)),   # weights: resident per K tile
            ],
            out_specs=pl.BlockSpec((TB, TK), lambda j, i: (i, j)),
        ),
        compiler_params=pltpu.CompilerParams(
            dimension_semantics=("parallel", "parallel"),
            vmem_limit_bytes=vmem_limit,
        ),
        cost_estimate=cost,
    )(na_rep, ef_rep, w2d)

    return out


def xavier_uniform(key, shape, dtype=jnp.float32):
    """Match torch.nn.init.xavier_uniform_ for a 3D tensor (A, E, K):
    fan_out = A * K, fan_in = E * K (receptive field = trailing dims)."""
    a_dim, e_dim, k_dim = shape
    fan_in = e_dim * k_dim
    fan_out = a_dim * k_dim
    bound = math.sqrt(6.0 / (fan_in + fan_out))
    return jax.random.uniform(key, shape, dtype=dtype, minval=-bound, maxval=bound)


if __name__ == "__main__":
    B, A, E, K = 16, 4, 8, 32  # batch, num_elements, num_edge_feats, num_feats_out

    key = jax.random.PRNGKey(0)
    k_w, k_na, k_ef = jax.random.split(key, 3)

    weights = xavier_uniform(k_w, (A, E, K))
    node_attrs = jax.random.normal(k_na, (B, A), dtype=jnp.float32)
    edge_feats = jax.random.normal(k_ef, (B, E), dtype=jnp.float32)

    out = sum_two_tensor_multiplied_by_weights(node_attrs, edge_feats, weights)
    out = jax.block_until_ready(out)

    ref = jnp.einsum("be,ba,aek->bk", edge_feats, node_attrs, weights)
    assert out.shape == (B, K)
    assert jnp.allclose(out, ref, atol=1e-5, rtol=1e-5)

    # Second check: ragged batch that exercises the remainder-masked tile path.
    B2 = 20
    na2 = jax.random.normal(jax.random.PRNGKey(1), (B2, A), dtype=jnp.float32)
    ef2 = jax.random.normal(jax.random.PRNGKey(2), (B2, E), dtype=jnp.float32)
    out2 = jax.block_until_ready(
        sum_two_tensor_multiplied_by_weights(na2, ef2, weights)
    )
    ref2 = jnp.einsum("be,ba,aek->bk", ef2, na2, weights)
    assert out2.shape == (B2, K)
    assert jnp.allclose(out2, ref2, atol=1e-5, rtol=1e-5)

    print("KERNEL_OK")
</pallas_src>

<mosaic_0001>
module attributes {stable_mosaic.version = 11 : i64} {
  func.func @_sum_weights_kernel(%arg0: i32, %arg1: i32, %arg2: memref<8x32xf32, #tpu.memory_space<vmem>>, %arg3: memref<8x32xf32, #tpu.memory_space<vmem>>, %arg4: memref<32x32xf32, #tpu.memory_space<vmem>>, %arg5: memref<8x32xf32, #tpu.memory_space<vmem>>) attributes {dimension_semantics = [#tpu.dimension_semantics<parallel>, #tpu.dimension_semantics<parallel>], iteration_bounds = array<i64: 1, 2>, scalar_prefetch = 0 : i64, scratch_operands = 0 : i64, tpu.core_type = #tpu.core_type<tc>, window_params = [{transform_indices = @transform_0, window_bounds = array<i64: 8, 32>}, {transform_indices = @transform_1, window_bounds = array<i64: 8, 32>}, {transform_indices = @transform_2, window_bounds = array<i64: 32, 32>}, {transform_indices = @transform_3, window_bounds = array<i64: 8, 32>}]} {
    %c0 = arith.constant 0 : index
    %c0_0 = arith.constant 0 : index
    %0 = vector.load %arg2[%c0, %c0_0] : memref<8x32xf32, #tpu.memory_space<vmem>>, vector<8x32xf32>
    %c0_1 = arith.constant 0 : index
    %c0_2 = arith.constant 0 : index
    %1 = vector.load %arg3[%c0_1, %c0_2] : memref<8x32xf32, #tpu.memory_space<vmem>>, vector<8x32xf32>
    %2 = arith.mulf %0, %1 : vector<8x32xf32>
    %c0_3 = arith.constant 0 : index
    %c0_4 = arith.constant 0 : index
    %3 = vector.load %arg4[%c0_3, %c0_4] : memref<32x32xf32, #tpu.memory_space<vmem>>, vector<32x32xf32>
    %cst = arith.constant dense<0.000000e+00> : vector<8x32xf32>
    %4 = tpu.matmul %2, %3, %cst {dimension_numbers = #tpu.dot_dimension_numbers<[1], [0], [0], [1], [0, 0, 1, 1], [], []>} : vector<8x32xf32>, vector<32x32xf32>, vector<8x32xf32> -> vector<8x32xf32>
    %c0_5 = arith.constant 0 : index
    %c0_6 = arith.constant 0 : index
    %5 = vector.load %arg5[%c0_5, %c0_6] : memref<8x32xf32, #tpu.memory_space<vmem>>, vector<8x32xf32>
    tpu.vector_store %arg5[%c0_5, %c0_6], %4 {strides = array<i32>} : memref<8x32xf32, #tpu.memory_space<vmem>>, vector<8x32xf32>,
    return
  }
  func.func @transform_0(%arg0: i32, %arg1: i32) -> (i32, i32) {
    %c0_i32 = arith.constant 0 : i32
    %c0_i32_0 = arith.constant 0 : i32
    return %arg1, %c0_i32 : i32, i32
  }
  func.func @transform_1(%arg0: i32, %arg1: i32) -> (i32, i32) {
    %c0_i32 = arith.constant 0 : i32
    %c0_i32_0 = arith.constant 0 : i32
    return %arg1, %c0_i32 : i32, i32
  }
  func.func @transform_2(%arg0: i32, %arg1: i32) -> (i32, i32) {
    %c0_i32 = arith.constant 0 : i32
    %c0_i32_0 = arith.constant 0 : i32
    return %c0_i32, %arg0 : i32, i32
  }
  func.func @transform_3(%arg0: i32, %arg1: i32) -> (i32, i32) {
    %c0_i32 = arith.constant 0 : i32
    return %arg1, %arg0 : i32, i32
  }
}

</mosaic_0001>

<bundles_post_ra>
// kernel: tpu_custom_call.1
= control target key start
LH: loop header
LB: loop body
LE: loop exit
PB: predicated region body
PF: predicated region fallthrough
CT: control target
= control target key end

     0   :  { %s1052_s0 = inlined_call_operand.hbm [shape: f32[16,32], index: 0, kind: input, shape index: {}]   ;;  %s1053_s1 = inlined_call_operand.hbm [shape: f32[16,32], index: 1, kind: input, shape index: {}]   ;;  %s1054_s2 = inlined_call_operand.hbm [shape: f32[32,32], index: 2, kind: input, shape index: {}]   ;;  %s1055_s3 = inlined_call_operand.hbm [shape: f32[16,32], index: 3, kind: output, shape index: {}]  }
   0x1   :  { %1061 = sst [smem:[#allocation14_spill]] %s1054_s2 }
   0x2   :  { %8 = vsyncpa [#allocation3], 0 }
   0x3   :  { %10 = vsyncpa [#allocation3 + $0x1], 0 }
   0x4   :  { %11 = vsyncpa [#allocation6], 0 }
   0x5   :  { %13 = vsyncpa [#allocation6 + $0x1], 0 }
   0x6   :  { %14 = vsyncpa [#allocation4], 0 }
   0x7   :  { %16 = vsyncpa [#allocation4 + $0x1], 0  ;;  %s801_s12 = smov 0   ;;  %s803_s13 = smov 0  }
   0x8   :  { %s805_s14 = smov 0   ;;  %s807_s15 = smov 0  }
   0x9   :  { %s809_s16 = smov 0   ;;  %s811_s17 = smov 0  }
   0xa LB: > { %s832_s18 = sadd.s32 4294967295, %s770_s17   ;;  %s469_s19 = sadd.s32 4294967294, %s770_s17   ;;  %s770_s17 = sphi %s811_s17, %s22_s17   ;;  %s766_s16 = sphi %s809_s16, %s1084_s16   ;;  %s762_s15 = sphi %s807_s15, %s1083_s15   ;;  %s758_s14 = sphi %s805_s14, %s1082_s14   ;;  %s754_s13 = sphi %s803_s13, %s1081_s13   ;;  %s750_s12 = sphi %s801_s12, %s1080_s12  }
   0xb   : > { %p54_p0 = scmp.ne.s32.totalorder %s754_s13, %s750_s12  ;;  %p1056_p1 = scmp.eq.s32.totalorder %s832_s18, 0 }
   0xc   : > { %p138_p3 = scmp.eq.s32.totalorder %s469_s19, 1  ;;  %p470_p5 = scmp.ge.s32.totalorder %s770_s17, 1 }
   0xd   : > { %p841_p4 = por %p1056_p1, %p54_p0  ;;  %p145_p7 = scmp.lt.s32.totalorder %s770_s17, 3 }
   0xe   : > { %p846_p6 = por %p138_p3, %p54_p0  ;;  %s772_s23 = smov [#allocation7]  }
   0xf   : > { %s1062_s20 = scalar_select %p841_p4, 1, 0 }
  0x10   : > { %s1063_s21 = scalar_select %p846_p6, 1, 0 }
  0x11   : > { %p851_p8 = pnand %p470_p5, %p145_p7  ;;  %s159_s24 = sshll.u32 %s772_s23, 4  ;;  %s160_s24 = int_to_ptr.vmem [resolvable:$true] %s159_s24 }
  0x12   : > { %s31_s26 = sadd.s32 1, %s766_s16  ;;  %s1066_s2 = sld [smem:[#allocation14_spill]] }
  0x13   : > { %s1064_s22 = scalar_select %p851_p8, 1, 0 }
  0x14   : > { %p519_p9 = pneg %p851_p8 }
  0x16   : > { %p860_p11 = pnand %p519_p9, %p1056_p1 }
  0x18   : > { %s592_s29 = scalar_lea.hbm %s1066_s2, 512  ;;  %p594_p13 = pneg %p860_p11 }
  0x19   : > { %p593_p12 = scmp.ne.s32.totalorder %s1066_s2, %s592_s29  ;;  %p599_p5 = scmp.lt.u32.totalorder %s592_s29, %s1066_s2 }
  0x1b   : > { %p595_p0 = pnand %p594_p13, %p593_p12 }
  0x1d   : > { %p596_p3 = pneg %p595_p0 }
  0x1f   : > { %p601_p7 = pnand %p599_p5, %p596_p3 }
  0x21   : > { %604 = shalt.err (!%p601_p7)
}
  0x22   : > { %s605_s7 = scalar_lea.vmem %s160_s24, 512  ;;  %p613_p2 = scmp.lt.s32.totalorder %s160_s24, %s160_s24 }
  0x23   : > { %p606_p9 = scmp.ne.s32.totalorder %s160_s24, %s605_s7  ;;  %p614_p6 = scmp.lt.s32.totalorder %s605_s7, %s605_s7 }
  0x25   : > { %p608_p10 = pnand %p606_p9, %p594_p13  ;;  %p615_p4 = por %p614_p6, %p613_p2 }
  0x27   : > { %p609_p1 = pneg %p608_p10 }
  0x29   : > { %p616_p8 = pnand %p615_p4, %p609_p1 }
  0x2b   : > { %619 = shalt.err (!%p616_p8)
}
  0x2c   : > { %s773_s8 = smov 128   ;;  %s774_s9 = smov 8  }
  0x2d   : > { %522 = dma.hbm_to_vmem [thread:$0]  (!%p860_p11), %s1066_s2, 512, %s160_s24, [#allocation6], %s773_s8, %s773_s8, %s774_s9  }
  0x2e   : > { %p32_p1 = scmp.ge.s32.totalorder %s31_s26, 2  ;;  %s41_s19 = sadd.s32 1, %s758_s14 }
  0x2f   : > { %p48_p2 = scmp.ne.s32.totalorder %s758_s14, %s754_s13  ;;  %p49_p4 = scmp.eq.s32.totalorder %s770_s17, 0 }
  0x30   : > { %s1086_s26 = smov (%p32_p1, %s31_s26), 0  ;;  %p1069_p8 = scmp.eq.s32.totalorder %s832_s18, 1 }
  0x31   : > { %1067 = sst [smem:[#allocation13_spill]] %s1086_s26  ;;  %p887_p6 = por %p49_p4, %p48_p2 }
  0x32   : > { %p893_p10 = por %p1069_p8, %p48_p2  ;;  %s38_s27 = ssub.s32 %s766_s16, %s1086_s26 }
  0x33   : > { %p535_p11 = scmp.lt.s32.totalorder %s770_s17, 2  ;;  %p39_p12 = scmp.eq.s32.totalorder %s38_s27, 0 }
  0x34   : > { %s1070_s25 = scalar_select %p893_p10, 1, 0 }
  0x35   : > { %s173_s24 = sand.u32 1, %s758_s14   ;;  %s474_s30 = sshll.u32 %s766_s16, 7 }
  0x36   : > { %s901_s28 = sshll.u32 %s173_s24, 3  ;;  %s910_s6 = scalar_lea.hbm %s1052_s0, %s474_s30 }
  0x37   : > { %s904_s29 = scalar_select %p39_p12, %s758_s14, %s41_s19  }
  0x38   : > { %s177_s7 = scalar_lea.vmem [#allocation2], %s901_s28  ;;  %p917_p13 = pnand %p535_p11, %p887_p6 }
  0x39   : > { %s184_s8 = sshll.u32 %s177_s7, 4  ;;  %s924_s19 = scalar_lea.hbm %s1053_s1, %s474_s30  ;;  %s913_s8 = int_to_ptr.vmem [resolvable:$true] %s184_s8 }
  0x3a   : > { %s191_s27 = sand.u32 1, %s770_s17   ;;  %s174_s4 = scalar_lea.sflag [#allocation3], %s173_s24 }
  0x3b   : > { %s620_s5 = scalar_lea.hbm %s910_s6, 128  ;;  %p622_p3 = pneg %p917_p13 }
  0x3c   : > { %p621_p0 = scmp.ne.s32.totalorder %s910_s6, %s620_s5  ;;  %s625_s2 = scalar_lea.hbm %s1052_s0, 256 }
  0x3d   : > { %p626_p9 = scmp.lt.u32.totalorder %s910_s6, %s1052_s0  ;;  %p627_p1 = scmp.lt.u32.totalorder %s625_s2, %s620_s5 }
  0x3e   : > { %p623_p5 = pnand %p622_p3, %p621_p0  ;;  %p629_p4 = scmp.lt.u32.totalorder %s620_s5, %s910_s6 }
  0x3f   : > { %p628_p2 = por %p627_p1, %p626_p9 }
  0x40   : > { %p624_p7 = pneg %p623_p5 }
  0x41   : > { %p630_p6 = por %p629_p4, %p628_p2 }
  0x43   : > { %p631_p8 = pnand %p630_p6, %p624_p7 }
  0x45   : > { %634 = shalt.err (!%p631_p8)
}
  0x46   : > { %s635_s24 = scalar_lea.vmem %s913_s8, 128  ;;  %s775_s30 = smov [#allocation2]  }
  0x47   : > { %p636_p11 = scmp.ne.s32.totalorder %s913_s8, %s635_s24  ;;  %s640_s11 = sshll.u32 %s775_s30, 4  ;;  %s641_s11 = int_to_ptr.vmem [resolvable:$false] %s640_s11 }
  0x48   : > { %s642_s26 = scalar_lea.vmem %s641_s11, 256  ;;  %p643_p5 = scmp.lt.s32.totalorder %s913_s8, %s641_s11 }
  0x49   : > { %p638_p12 = pnand %p636_p11, %p622_p3  ;;  %p644_p9 = scmp.lt.s32.totalorder %s642_s26, %s635_s24 }
  0x4b   : > { %p639_p0 = pneg %p638_p12  ;;  %p645_p1 = por %p644_p9, %p643_p5 }
  0x4d   : > { %p646_p2 = pnand %p645_p1, %p639_p0 }
  0x4f   : > { %649 = shalt.err (!%p646_p2)
}
  0x50   : > { %526 = dma.hbm_to_vmem [thread:$0]  (!%p917_p13), %s910_s6, 128, %s913_s8, %s174_s4  }
  0x51   : > { %s195_s2 = scalar_lea.vmem [#allocation5], %s901_s28  ;;  %s192_s23 = scalar_lea.sflag [#allocation6], %s191_s27 }
  0x52   : > { %s202_s5 = sshll.u32 %s195_s2, 4  ;;  %s650_s7 = scalar_lea.hbm %s924_s19, 128  ;;  %s203_s5 = int_to_ptr.vmem [resolvable:$true] %s202_s5 }
  0x53   : > { %p651_p7 = scmp.ne.s32.totalorder %s924_s19, %s650_s7  ;;  %s655_s30 = scalar_lea.hbm %s1053_s1, 256 }
  0x54   : > { %p656_p8 = scmp.lt.u32.totalorder %s924_s19, %s1053_s1  ;;  %p657_p11 = scmp.lt.u32.totalorder %s655_s30, %s650_s7 }
  0x55   : > { %p653_p4 = pnand %p651_p7, %p622_p3  ;;  %p659_p0 = scmp.lt.u32.totalorder %s650_s7, %s924_s19 }
  0x56   : > { %p658_p12 = por %p657_p11, %p656_p8 }
  0x57   : > { %p654_p6 = pneg %p653_p4 }
  0x58   : > { %p660_p5 = por %p659_p0, %p658_p12 }
  0x5a   : > { %p661_p9 = pnand %p660_p5, %p654_p6 }
  0x5c   : > { %664 = shalt.err (!%p661_p9)
}
  0x5d   : > { %s665_s28 = scalar_lea.vmem %s203_s5, 128  ;;  %s776_s6 = smov [#allocation5]  }
  0x5e   : > { %p666_p1 = scmp.ne.s32.totalorder %s203_s5, %s665_s28  ;;  %s670_s8 = sshll.u32 %s776_s6, 4  ;;  %s671_s8 = int_to_ptr.vmem [resolvable:$false] %s670_s8 }
  0x5f   : > { %s672_s27 = scalar_lea.vmem %s671_s8, 256  ;;  %p673_p4 = scmp.lt.s32.totalorder %s203_s5, %s671_s8 }
  0x60   : > { %p668_p2 = pnand %p666_p1, %p622_p3  ;;  %p674_p10 = scmp.lt.s32.totalorder %s672_s27, %s665_s28 }
  0x62   : > { %p669_p7 = pneg %p668_p2  ;;  %p675_p8 = por %p674_p10, %p673_p4 }
  0x64   : > { %p676_p11 = pnand %p675_p8, %p669_p7 }
  0x66   : > { %679 = shalt.err (!%p676_p11)
}
  0x67   : > { %529 = dma.hbm_to_vmem [thread:$0]  (!%p917_p13), %s924_s19, 128, %s203_s5, %s192_s23  }
  0x68   : > { %p1072_p6 = scmp.ne.s32.totalorder %s1064_s22, 0 }
  0x69   : > { %s977_s4 = sand.u32 (!%p1072_p6), 1, %s754_s13   ;;  %p1073_p10 = scmp.ne.s32.totalorder (!%p1072_p6), %s1062_s20, 0 }
  0x6a   : > { %211 = sbr.rel (%p1072_p6) target bundleno = 356 (0x164), region = 32  ;;  %s980_s2 = sshll.u32 (!%p1072_p6), %s977_s4, 3 }
  0x6b   : > { %s214_s7 = scalar_lea.sflag (!%p1072_p6), [#allocation3], %s977_s4  ;;  %s217_s10 = scalar_lea.vmem (!%p1072_p6), [#allocation2], %s980_s2 }
  0x71   : > { %733 = dma.done.wait (%p1073_p10), %s214_s7, 128  }
  0x72   : > { %735 = vsyncadd (%p1073_p10), %s214_s7, 4294967168  ;;  %s222_s22 = sand.u32 1, %s832_s18   ;;  %s226_s19 = scalar_lea.vmem [#allocation5], %s980_s2 }
  0x73   : > { %s223_s9 = scalar_lea.sflag [#allocation6], %s222_s22 }
  0x74   : > { %737 = dma.done.wait (%p1073_p10), %s223_s9, 128  }
  0x75   : > { %739 = vsyncadd (%p1073_p10), %s223_s9, 4294967168  ;;  %p1074_p13 = scmp.eq.s32.totalorder %s832_s18, 0 }
  0x77   : > { %741 = dma.done.wait (%p1074_p13), [#allocation6], 512   ;;  %p1075_p3 = pmov %p1074_p13 }
  0x78   : > { %v777_v0 = vmov 0.0|0.0   ;;  %vm778_vm0 = vmmov 0   ;;  %v779_v1 = vmov 0.0   ;;  %v261_v2 = vld [vmem:[#allocation7] sm:$0xff]  ;;  %v262_v3 = vld [vmem:[#allocation7 + $0x8] sm:$0xff]  ;;  %v263_v4 = vld [vmem:[#allocation7 + $0x10] sm:$0xff] }
  0x79   : > { %743 = vsyncadd (%p1075_p3), [#allocation6], 4294966784  ;;  %503 = vmatprep.subr.bf16.mxu0 %v777_v0  ;;  %500 = vmatprep.mubr.msk.f32.mxu0 %vm778_vm0, %v779_v1  ;;  %v504_v5 = vpack.c.bf16 %v262_v3, %v261_v2  ;;  %v264_v6 = vld [vmem:[#allocation7 + $0x18] sm:$0xff]  ;;  %v258_v8 = vld [vmem:[%s217_s10] sm:$0xff]  ;;  %vm265_vm1 = vcmask 261120   ;;  %s484_s18 = sshll.u32 %s762_s15, 7 }
  0x7a   : > { %v507_v7 = vpack.c.bf16 %v264_v6, %v263_v4  ;;  %v259_v9 = vld [vmem:[%s226_s19] sm:$0xff]  ;;  %s257_s20 = scalar_lea.vmem [#allocation8], %s980_s2  ;;  %s1003_s30 = scalar_lea.hbm %s1055_s3, %s484_s18 }
  0x7b   : > { %505 = vmatpush3.bf16.msra.mxu0 %v504_v5  ;;  %v260_v10 = vmul.f32 %v259_v9, %v258_v8  ;;  %s355_s5 = sshll.u32 %s257_s20, 4  ;;  %s341_s11 = scalar_lea.sflag [#allocation4], %s977_s4  ;;  %s1005_s5 = int_to_ptr.vmem [resolvable:$true] %s355_s5 }
  0x7c   : > { %506 = vmatprep.subr.bf16.mxu0 %v777_v0  ;;  %s680_s26 = scalar_lea.vmem %s1005_s5, 128  ;;  %p1076_p0 = scmp.ne.s32.totalorder %s1070_s25, 0 }
  0x7d   : > { %p681_p12 = scmp.ne.s32.totalorder %s1005_s5, %s680_s26  ;;  %s780_s15 = smov [#allocation8]  }
  0x7e   : > { %s684_s28 = sshll.u32 %s780_s15, 4  ;;  %s685_s28 = int_to_ptr.vmem [resolvable:$false] %s684_s28 }
  0x7f   : > { %508 = vmatpush3.bf16.msra.mxu0 %v507_v7  ;;  %p682_p5 = pnand %p681_p12, %p1076_p0  ;;  %s686_s6 = scalar_lea.vmem %s685_s28, 256 }
  0x80   : > { %p687_p1 = scmp.lt.s32.totalorder %s1005_s5, %s685_s28  ;;  %p688_p2 = scmp.lt.s32.totalorder %s686_s6, %s680_s26 }
  0x81   : > { %p683_p9 = pneg %p682_p5 }
  0x82   : > { %501 = vmatmul.mubr.msk.f32.vlgmr.msra.gmra.mrb[0].mxu0 %vm265_vm1, %v260_v10  ;;  %p689_p7 = por %p688_p2, %p687_p1 }
  0x84   : > { %p690_p4 = pnand %p689_p7, %p683_p9 }
 0x155   : > { %v335_v11 = vpop.f32.mrb[0].mxu0 }
 0x156   : > { %339 = vst.msk [vmem:[%s257_s20] sm:$0xff] %vm265_vm1, %v335_v11  ;;  %v502_v12 = vpop.f32.mrb[1].mxu0 }
 0x157   : > { %693 = shalt.err (!%p690_p4)
}
 0x158   : > { %s694_s8 = scalar_lea.hbm %s1003_s30, 128  ;;  %s698_s2 = scalar_lea.hbm %s1055_s3, 256 }
 0x159   : > { %p695_p8 = scmp.ne.s32.totalorder %s1003_s30, %s694_s8  ;;  %p699_p10 = scmp.lt.u32.totalorder %s1003_s30, %s1055_s3 }
 0x15a   : > { %p700_p13 = scmp.lt.u32.totalorder %s698_s2, %s694_s8  ;;  %p702_p12 = scmp.lt.u32.totalorder %s694_s8, %s1003_s30 }
 0x15b   : > { %p696_p11 = pnand %p695_p8, %p1076_p0 }
 0x15c   : > { %p701_p3 = por %p700_p13, %p699_p10 }
 0x15d   : > { %p697_p6 = pneg %p696_p11 }
 0x15e   : > { %p703_p5 = por %p702_p12, %p701_p3 }
 0x160   : > { %p704_p9 = pnand %p703_p5, %p697_p6 }
 0x162   : > { %707 = shalt.err (!%p704_p9)
}
 0x163   : > { %517 = dma.vmem_to_hbm [thread:$0]  (%p1076_p0), %s1005_s5, 128, %s1003_s30, %s341_s11  }
 0x164 PF: > { %s367_s22 = sand.u32 1, %s750_s12   ;;  %p1077_p1 = scmp.ne.s32.totalorder %s1063_s21, 0 }
 0x165   : > { %p1078_p2 = scmp.ge.s32.totalorder %s770_s17, 2  ;;  %s368_s9 = scalar_lea.sflag [#allocation4], %s367_s22 }
 0x167   : > { %p531_p7 = pnand %p1078_p2, %p1077_p1 }
 0x169   : > { %745 = dma.done.wait (!%p531_p7), %s368_s9, 128  }
 0x16a   : > { %747 = vsyncadd (!%p531_p7), %s368_s9, 4294967168  ;;  %s22_s17 = sadd.s32 1, %s770_s17   ;;  %s1079_s25 = sld [smem:[#allocation13_spill]] }
 0x16b   : > { %p19_p4 = scmp.ge.s32.totalorder %s22_s17, 4   ;;  %s1080_s12 = smov %s754_s13 }
 0x16c   : > { %s1081_s13 = smov %s758_s14  ;;  %s1082_s14 = smov %s904_s29 }
 0x16d   : > { %s1083_s15 = smov %s766_s16  ;;  %21 = sbr.rel (!%p19_p4) target bundleno = 10 (0xa), region = 95 }
 0x170   : > { %s1084_s16 = smov %s1079_s25 }
 0x174   :  { %373 = vsyncpa [#allocation3], 1 }
 0x175   :  { %375 = vsyncpa [#allocation3 + $0x1], 1 }
 0x176   :  { %376 = vsyncpa [#allocation6], 1 }
 0x177   :  { %378 = vsyncpa [#allocation6 + $0x1], 1 }
 0x178   :  { %379 = vsyncpa [#allocation4], 1 }
 0x179   :  { %381 = vsyncpa [#allocation4 + $0x1], 1 }

</bundles_post_ra>
